<compile_context>
chip_gen: v6e
topology: v6e:2x2x1
jax: 0.10.0
libtpu: 0.0.40
codegen_flags: <defaults>
</compile_context>

<pallas_src>
import jax
import jax.numpy as jnp
from jax.experimental import pallas as pl
from jax.experimental.pallas import tpu as pltpu

_LANE = 128                      # lane (last-dim) granularity of a vreg
_SUBLANE = 8                     # sublane granularity of a vreg
_FAST_PATH_BYTES = 256 * 1024    # below this, XLA fused elementwise wins


def _discrete_gate_kernel(w_ref, x_ref, o_ref):
    # w_ref: (1, TF), x_ref / o_ref: (TB, TF)
    # Fused select: (w >= 0) ? x : 0 -- weight broadcast over the sublane axis.
    o_ref[...] = jnp.where(w_ref[...] >= 0.0, x_ref[...], 0.0)


def _vmem_capacity_bytes() -> int:
    try:
        return int(pltpu.get_tpu_info().vmem_capacity_bytes)
    except Exception:
        return 64 * 1024 * 1024  # conservative fallback (v7x per-TC physical VMEM)


def _choose_tiles(B: int, F: int, elt_bytes: int, tile_budget_bytes: int):
    """(8,128)-legal tiles sized to ~tile_budget_bytes for the x tile.

    Tiles never exceed the corresponding array dim (full-dim blocks are used
    for short dims), so only the standard ragged last-block overhang occurs.
    """
    budget_elems = max(tile_budget_bytes // elt_bytes, _SUBLANE * _LANE)

    # Feature tile: multiple of 128 (lane-dense stores), or the full short dim.
    if F <= _LANE:
        TF = F
    else:
        max_f_blocks = max(budget_elems // (_SUBLANE * _LANE), 1)
        TF = min(F // _LANE, max_f_blocks) * _LANE

    # Batch tile: multiple of 8, or the full short dim; uses remaining budget.
    if B <= _SUBLANE:
        TB = B
    else:
        rows = max(budget_elems // max(TF, 1), _SUBLANE)
        TB = min(B // _SUBLANE, rows // _SUBLANE) * _SUBLANE

    return TB, TF


def discrete_gate(x: jax.Array, weight: jax.Array, *, force_pallas: bool = False) -> jax.Array:
    """out = (weight >= 0) * x, weight broadcast over the leading dims of x."""
    orig_shape = x.shape
    F = x.shape[-1]
    assert weight.shape == (F,), "weight must match the last dim of x"

    x2 = x.reshape(-1, F)
    B = x2.shape[0]
    elt = x2.dtype.itemsize

    # ---- small-problem fast path: kernel launch/DMA fixed cost dominates ----
    if not force_pallas and B * F * elt <= _FAST_PATH_BYTES:
        return jnp.where(weight >= 0.0, x, jnp.zeros((), x.dtype))

    # ---- byte-budgeted, generation-aware tile selection ----------------------
    cap = _vmem_capacity_bytes()
    tile_budget = min(max(cap // 16, 512 * 1024), 8 * 1024 * 1024)
    TB, TF = _choose_tiles(B, F, elt, tile_budget)

    # Feature OUTER, batch INNER: the weight block index only changes on the
    # outer axis, so its copy is elided across the whole inner batch sweep.
    grid = (pl.cdiv(F, TF), pl.cdiv(B, TB))

    # Double-buffered x + out tiles plus the (revisited) weight block.
    footprint = 4 * TB * TF * elt + 2 * TF * weight.dtype.itemsize
    vmem_limit = int(min(cap, max(32 * 1024 * 1024, footprint + (4 << 20))))

    out = pl.pallas_call(
        _discrete_gate_kernel,
        out_shape=jax.ShapeDtypeStruct((B, F), x.dtype),
        grid_spec=pltpu.PrefetchScalarGridSpec(
            num_scalar_prefetch=0,
            grid=grid,
            in_specs=[
                # weight slice: tiny, indexed only by the (outer) feature tile
                pl.BlockSpec((1, TF), lambda j, i: (0, j)),
                # input tile: streamed with double-buffered DMA
                pl.BlockSpec((TB, TF), lambda j, i: (i, j)),
            ],
            out_specs=pl.BlockSpec((TB, TF), lambda j, i: (i, j)),
        ),
        compiler_params=pltpu.CompilerParams(
            dimension_semantics=("parallel", "parallel"),
            vmem_limit_bytes=vmem_limit,
        ),
    )(weight.reshape(1, F), x2)

    return out.reshape(orig_shape)


if __name__ == "__main__":
    key = jax.random.PRNGKey(0)
    k_w1, k_x1, k_w2, k_x2 = jax.random.split(key, 4)

    # --- Case 1: module-sized demo (out_features=32, batch=8) ---------------
    # Forced through the Pallas kernel to exercise the short-dim path
    # (F < 128 and B <= 8 -> full-dim blocks); also checks the fast path.
    F1, B1 = 32, 8
    w1 = jax.random.uniform(k_w1, (F1,), dtype=jnp.float32, minval=-0.1, maxval=0.1)
    x1 = jax.random.normal(k_x1, (B1, F1), dtype=jnp.float32)
    ref1 = jnp.where(w1 >= 0.0, 1.0, 0.0)[None, :] * x1

    out1 = discrete_gate(x1, w1, force_pallas=True)   # Pallas path
    jax.block_until_ready(out1)
    assert out1.shape == ref1.shape and jnp.allclose(out1, ref1), "case 1 (pallas) mismatch"

    out1_fast = discrete_gate(x1, w1)                 # small-problem fast path
    jax.block_until_ready(out1_fast)
    assert jnp.allclose(out1_fast, ref1), "case 1 (fast path) mismatch"

    # --- Case 2: ragged, non-(8,128)-aligned shape above the fast-path cutoff
    # Exercises pad-free ragged-edge handling on both grid axes.
    F2, B2 = 520, 300
    w2 = jax.random.uniform(k_w2, (F2,), dtype=jnp.float32, minval=-0.1, maxval=0.1)
    x2 = jax.random.normal(k_x2, (B2, F2), dtype=jnp.float32)
    ref2 = jnp.where(w2 >= 0.0, 1.0, 0.0)[None, :] * x2

    out2 = discrete_gate(x2, w2)
    jax.block_until_ready(out2)
    assert out2.shape == ref2.shape and jnp.allclose(out2, ref2), "case 2 mismatch"

    print("KERNEL_OK")
</pallas_src>

<mosaic_0001>
module attributes {stable_mosaic.version = 11 : i64} {
  func.func @_discrete_gate_kernel(%arg0: i32, %arg1: i32, %arg2: memref<1x32xf32, #tpu.memory_space<vmem>>, %arg3: memref<8x32xf32, #tpu.memory_space<vmem>>, %arg4: memref<8x32xf32, #tpu.memory_space<vmem>>) attributes {dimension_semantics = [#tpu.dimension_semantics<parallel>, #tpu.dimension_semantics<parallel>], iteration_bounds = array<i64: 1, 1>, scalar_prefetch = 0 : i64, scratch_operands = 0 : i64, tpu.core_type = #tpu.core_type<tc>, window_params = [{transform_indices = @transform_0, window_bounds = array<i64: 1, 32>}, {transform_indices = @transform_1, window_bounds = array<i64: 8, 32>}, {transform_indices = @transform_2, window_bounds = array<i64: 8, 32>}]} {
    %c0 = arith.constant 0 : index
    %c0_0 = arith.constant 0 : index
    %0 = vector.load %arg2[%c0, %c0_0] : memref<1x32xf32, #tpu.memory_space<vmem>>, vector<1x32xf32>
    %cst = arith.constant 0.000000e+00 : f32
    %1 = vector.broadcast %cst : f32 to vector<1x32xf32>
    %2 = arith.cmpf oge, %0, %1 : vector<1x32xf32>
    %c0_1 = arith.constant 0 : index
    %c0_2 = arith.constant 0 : index
    %3 = vector.load %arg3[%c0_1, %c0_2] : memref<8x32xf32, #tpu.memory_space<vmem>>, vector<8x32xf32>
    %cst_3 = arith.constant 0.000000e+00 : f32
    %4 = vector.shape_cast %2 : vector<1x32xi1> to vector<1x32xi1>
    %5 = vector.broadcast %4 : vector<1x32xi1> to vector<8x32xi1>
    %6 = vector.broadcast %cst_3 : f32 to vector<8x32xf32>
    %7 = arith.select %5, %3, %6 : vector<8x32xi1>, vector<8x32xf32>
    %c0_4 = arith.constant 0 : index
    %c0_5 = arith.constant 0 : index
    %8 = vector.load %arg4[%c0_4, %c0_5] : memref<8x32xf32, #tpu.memory_space<vmem>>, vector<8x32xf32>
    tpu.vector_store %arg4[%c0_4, %c0_5], %7 {strides = array<i32>} : memref<8x32xf32, #tpu.memory_space<vmem>>, vector<8x32xf32>,
    return
  }
  func.func @transform_0(%arg0: i32, %arg1: i32) -> (i32, i32) {
    %c0_i32 = arith.constant 0 : i32
    %c0_i32_0 = arith.constant 0 : i32
    return %c0_i32, %arg0 : i32, i32
  }
  func.func @transform_1(%arg0: i32, %arg1: i32) -> (i32, i32) {
    %c0_i32 = arith.constant 0 : i32
    return %arg1, %arg0 : i32, i32
  }
  func.func @transform_2(%arg0: i32, %arg1: i32) -> (i32, i32) {
    %c0_i32 = arith.constant 0 : i32
    return %arg1, %arg0 : i32, i32
  }
}

</mosaic_0001>

<bundles_post_ra>
// kernel: tpu_custom_call.1
= control target key start
LH: loop header
LB: loop body
LE: loop exit
PB: predicated region body
PF: predicated region fallthrough
CT: control target
= control target key end

     0   :  { %7 = vsyncpa [#allocation3], 0  ;;  %s162_s0 = inlined_call_operand.hbm [shape: f32[1,32], index: 0, kind: input, shape index: {}]   ;;  %s163_s1 = inlined_call_operand.hbm [shape: f32[8,32], index: 1, kind: input, shape index: {}]   ;;  %s164_s2 = inlined_call_operand.hbm [shape: f32[8,32], index: 2, kind: output, shape index: {}]  }
   0x1   :  { %8 = vsyncpa [#allocation6], 0 }
   0x2   :  { %9 = vsyncpa [#allocation4], 0  ;;  %s134_s9 = smov [#allocation2]   ;;  %s135_s11 = smov [#allocation5]  }
   0x3   :  { %s16_s10 = sshll.u32 %s134_s9, 4  ;;  %s26_s12 = sshll.u32 %s135_s11, 4  ;;  %s17_s10 = int_to_ptr.vmem [resolvable:$true] %s16_s10  ;;  %s27_s12 = int_to_ptr.vmem [resolvable:$true] %s26_s12 }
   0x4   :  { %s76_s13 = scalar_lea.vmem %s17_s10, 16  ;;  %s80_s14 = scalar_lea.vmem %s17_s10, 32 }
   0x5   :  { %p77_p0 = scmp.ne.s32.totalorder %s17_s10, %s76_s13  ;;  %p81_p1 = scmp.lt.s32.totalorder %s17_s10, %s17_s10 }
   0x6   :  { %p82_p2 = scmp.lt.s32.totalorder %s80_s14, %s76_s13 }
   0x8   :  { %p83_p3 = por %p82_p2, %p81_p1 }
   0xa   :  { %p84_p4 = pnand %p83_p3, %p77_p0 }
   0xc   :  { %87 = shalt.err (!%p84_p4)
}
   0xd   :  { %19 = dma.hbm_to_vmem [thread:$0]  %s162_s0, 16, %s17_s10, [#allocation3]  }
   0xe   :  { %s96_s17 = scalar_lea.vmem %s27_s12, 128  ;;  %p101_p6 = scmp.lt.s32.totalorder %s27_s12, %s27_s12 }
   0xf   :  { %p97_p5 = scmp.ne.s32.totalorder %s27_s12, %s96_s17  ;;  %p102_p7 = scmp.lt.s32.totalorder %s96_s17, %s96_s17 }
  0x11   :  { %p103_p8 = por %p102_p7, %p101_p6 }
  0x13   :  { %p104_p9 = pnand %p103_p8, %p97_p5 }
  0x15   :  { %107 = shalt.err (!%p104_p9)
}
  0x16   :  { %29 = dma.hbm_to_vmem [thread:$0]  %s163_s1, 128, %s27_s12, [#allocation6]  }
  0x17   :  { %128 = dma.done.wait [#allocation3], 16  }
  0x18   :  { %129 = vsyncadd [#allocation3], 4294967280 }
  0x19   :  { %130 = dma.done.wait [#allocation6], 128  }
  0x1a   :  { %131 = vsyncadd [#allocation6], 4294967168  ;;  %v40_v0 = vlaneseq  ;;  %v36_v3 = vld [vmem:[#allocation2] sm:$0x1]  ;;  %v136_v4 = vmov 0   ;;  %s137_s0 = smov [#allocation7]  }
  0x1b   :  { %vm37_vm0 = vcmp.ge.f32.partialorder %v36_v3, 0.0  ;;  %s54_s20 = sshll.u32 %s137_s0, 4  ;;  %v38_v6 = vld [vmem:[#allocation5] sm:$0xff]  ;;  %vm46_vm1 = vcmask 261120   ;;  %s55_s20 = int_to_ptr.vmem [resolvable:$true] %s54_s20 }
  0x1c   :  { %v41_v1 = vshrl.u32 %v40_v0, 7  ;;  %v39_v5 = vsel %vm37_vm0, 1, %v136_v4  ;;  %s108_s1 = scalar_lea.vmem %s55_s20, 128  ;;  %p113_p11 = scmp.lt.s32.totalorder %s55_s20, %s55_s20 }
  0x1d   :  { %p109_p10 = scmp.ne.s32.totalorder %s55_s20, %s108_s1  ;;  %p114_p12 = scmp.lt.s32.totalorder %s108_s1, %s108_s1 }
  0x1e   :  { %v42_v2 = vsub.s32 0, %v41_v1 }
  0x1f   :  { %p115_p13 = por %p114_p12, %p113_p11 }
  0x20   :  { %v43_v7 = vrot.slane %v39_v5, %v42_v2 }
  0x21   :  { %p116_p0 = pnand %p115_p13, %p109_p10 }
  0x22   :  { %vm44_vm2 = vcmp.eq.s32.totalorder %v43_v7, 1 }
  0x23   :  { %v45_v8 = vsel %vm44_vm2, %v38_v6, 0.0 }
  0x24   :  { %47 = vst.msk [vmem:[#allocation7] sm:$0xff] %vm46_vm1, %v45_v8 }
  0x25   :  { %119 = shalt.err (!%p116_p0)
}
  0x26   :  { %57 = dma.vmem_to_hbm [thread:$0]  %s55_s20, 128, %s164_s2, [#allocation4]  }
  0x27   :  { %132 = dma.done.wait [#allocation4], 128  }
  0x28   :  { %133 = vsyncadd [#allocation4], 4294967168 }
  0x29   :  { %61 = vsyncpa [#allocation3], 1 }
  0x2a   :  { %62 = vsyncpa [#allocation6], 1 }
  0x2b   :  { %63 = vsyncpa [#allocation4], 1 }

</bundles_post_ra>
